<compile_context>
chip_gen: v7x
topology: tpu7x:2x2x1
jax: 0.10.0
libtpu: 0.0.40
codegen_flags: <defaults>
</compile_context>

<pallas_src>
import functools

import jax
import jax.numpy as jnp
from jax.experimental import pallas as pl
from jax.experimental.pallas import tpu as pltpu


def _round_up(x: int, m: int) -> int:
    return ((x + m - 1) // m) * m


def _cdiv(a: int, b: int) -> int:
    return (a + b - 1) // b


def _mlp3_kernel(x_ref, w1_ref, b1_ref, w2_ref, b2_ref, w3_ref, b3_ref, o_ref):
    # Layer 1: Linear + ReLU (bf16 operands, f32 accumulation)
    x = x_ref[...].astype(jnp.bfloat16)
    h = jnp.dot(x, w1_ref[...], preferred_element_type=jnp.float32)
    h = jnp.maximum(h + b1_ref[...], 0.0)
    # Layer 2: Linear + ReLU
    h = jnp.dot(h.astype(jnp.bfloat16), w2_ref[...],
                preferred_element_type=jnp.float32)
    h = jnp.maximum(h + b2_ref[...], 0.0)
    # Layer 3 (output head, lane-padded to 128): Linear, no activation.
    out = jnp.dot(h.astype(jnp.bfloat16), w3_ref[...],
                  preferred_element_type=jnp.float32) + b3_ref[...]
    # bf16 store: halves the dominant (lane-padded) HBM writeback.
    o_ref[...] = out.astype(o_ref.dtype)


@functools.partial(jax.jit, static_argnames=("action_dim", "tile_b"))
def actor_discrete_ppo_forward(state, params, *, action_dim: int, tile_b: int = 1024):
    """Fused forward pass of the 3-layer MLP (num_layer=3).

    state:  (B, state_dim) float32
    params: tuple (w1p, b1p, w2p, b2p, w3p, b3p), all zero-padded so that the
            hidden and output dims are multiples of 128 lanes:
            w1p (state_dim, mid_pad) bf16,  b1p (1, mid_pad) f32,
            w2p (mid_pad, mid_pad)   bf16,  b2p (1, mid_pad) f32,
            w3p (mid_pad, adim_pad)  bf16,  b3p (1, adim_pad) f32
    returns logits (B, action_dim) float32

    Precision note: bf16 weights / bf16 intermediate operands with f32
    accumulation and a bf16 logits store -- not bitwise identical to the f32
    PyTorch module, but well within ~1e-2 for PPO logits at these sizes.
    """
    w1, b1, w2, b2, w3p, b3p = params
    B, state_dim = state.shape
    mid_pad = w1.shape[1]
    adim_pad = w3p.shape[1]

    # Batch tile: multiple of 8 sublanes, capped at `tile_b` (default 1024),
    # clamped down for tiny batches.
    tile_b = max(8, min(tile_b, _round_up(B, 8)))
    # v7x: for large batches make sure there are >=2 grid steps so the
    # "parallel" batch axis can shard across the two TensorCores.
    if B >= 512:
        tile_b = max(8, min(tile_b, _round_up(_cdiv(B, 2), 8)))
    num_tiles = _cdiv(B, tile_b)
    b_pad = num_tiles * tile_b
    if b_pad != B:
        state = jnp.pad(state, ((0, b_pad - B), (0, 0)))

    flops = 2 * b_pad * (state_dim * mid_pad
                         + mid_pad * mid_pad
                         + mid_pad * adim_pad)
    bytes_accessed = (
        state.size * state.dtype.itemsize
        + sum(int(p.size) * p.dtype.itemsize for p in params)
        + b_pad * adim_pad * 2)  # bf16 output

    const = lambda i: (0, 0)  # weights/biases: same block every grid step

    out_padded = pl.pallas_call(
        _mlp3_kernel,
        out_shape=jax.ShapeDtypeStruct((b_pad, adim_pad), jnp.bfloat16),
        grid=(num_tiles,),
        in_specs=[
            pl.BlockSpec((tile_b, state_dim), lambda i: (i, 0)),  # state tile
            pl.BlockSpec((state_dim, mid_pad), const),            # w1 (padded)
            pl.BlockSpec((1, mid_pad), const),                    # b1 (padded)
            pl.BlockSpec((mid_pad, mid_pad), const),              # w2 (padded)
            pl.BlockSpec((1, mid_pad), const),                    # b2 (padded)
            pl.BlockSpec((mid_pad, adim_pad), const),             # w3 (padded)
            pl.BlockSpec((1, adim_pad), const),                   # b3 (padded)
        ],
        out_specs=pl.BlockSpec((tile_b, adim_pad), lambda i: (i, 0)),
        compiler_params=pltpu.CompilerParams(
            dimension_semantics=("parallel",)),
        cost_estimate=pl.CostEstimate(
            flops=flops, transcendentals=0, bytes_accessed=bytes_accessed),
    )(state, w1, b1, w2, b2, w3p, b3p)

    # Drop batch padding and the lane padding of the head; return f32 logits
    # to match the module's forward() signature. (Do NOT softmax the padded
    # (B, adim_pad) array -- the padded lanes carry zero logits.)
    return out_padded[:B, :action_dim].astype(jnp.float32)


def init_params(key, state_dim, mid_dim, action_dim):
    """Deterministic synthetic init (uniform, nn.Linear-like scaling).

    Weights are stored bf16 (fast MXU path, halves weight traffic); biases
    stay f32. mid_dim and action_dim are zero-padded up to multiples of 128
    lanes so every layer's vregs / MXU pushes and the HBM store are lane-dense.
    Zero padding is numerically exact (zero weight cols/rows, zero bias,
    ReLU(0)=0).
    """
    ks = jax.random.split(key, 6)

    def lin(kw, kb, fan_in, fan_out):
        bound = 1.0 / jnp.sqrt(jnp.float32(fan_in))
        w = jax.random.uniform(kw, (fan_in, fan_out), jnp.float32, -bound, bound)
        b = jax.random.uniform(kb, (1, fan_out), jnp.float32, -bound, bound)
        return w, b

    w1, b1 = lin(ks[0], ks[1], state_dim, mid_dim)
    w2, b2 = lin(ks[2], ks[3], mid_dim, mid_dim)
    w3, b3 = lin(ks[4], ks[5], mid_dim, action_dim)

    mid_pad = _round_up(max(mid_dim, 1), 128)
    adim_pad = _round_up(max(action_dim, 1), 128)

    w1p = jnp.zeros((state_dim, mid_pad), jnp.float32).at[:, :mid_dim].set(w1)
    b1p = jnp.zeros((1, mid_pad), jnp.float32).at[:, :mid_dim].set(b1)
    w2p = jnp.zeros((mid_pad, mid_pad), jnp.float32).at[:mid_dim, :mid_dim].set(w2)
    b2p = jnp.zeros((1, mid_pad), jnp.float32).at[:, :mid_dim].set(b2)
    w3p = jnp.zeros((mid_pad, adim_pad), jnp.float32).at[:mid_dim, :action_dim].set(w3)
    b3p = jnp.zeros((1, adim_pad), jnp.float32).at[:, :action_dim].set(b3)

    return (w1p.astype(jnp.bfloat16), b1p,
            w2p.astype(jnp.bfloat16), b2p,
            w3p.astype(jnp.bfloat16), b3p)


def _reference_forward(state, params, action_dim):
    """Plain-JAX reference with the identical bf16-operand / f32-accum /
    bf16-store math as the kernel."""
    w1, b1, w2, b2, w3p, b3p = params
    h = jnp.dot(state.astype(jnp.bfloat16), w1,
                preferred_element_type=jnp.float32)
    h = jnp.maximum(h + b1, 0.0)
    h = jnp.dot(h.astype(jnp.bfloat16), w2,
                preferred_element_type=jnp.float32)
    h = jnp.maximum(h + b2, 0.0)
    out = jnp.dot(h.astype(jnp.bfloat16), w3p,
                  preferred_element_type=jnp.float32) + b3p
    out = out.astype(jnp.bfloat16)
    return out[:, :action_dim].astype(jnp.float32)


if __name__ == "__main__":
    # ActorDiscretePPO(mid_dim=32, num_layer=3, state_dim=16, action_dim=4)
    batch, state_dim, mid_dim, action_dim = 2, 16, 32, 4

    key = jax.random.PRNGKey(0)
    k_params, k_state = jax.random.split(key)
    params = init_params(k_params, state_dim, mid_dim, action_dim)
    state = jax.random.normal(k_state, (batch, state_dim), jnp.float32)

    logits = actor_discrete_ppo_forward(state, params, action_dim=action_dim)
    jax.block_until_ready(logits)

    ref = _reference_forward(state, params, action_dim)
    assert logits.shape == (batch, action_dim)
    assert jnp.allclose(logits, ref, atol=1e-2, rtol=1e-2), (
        f"max abs err {jnp.max(jnp.abs(logits - ref))}")

    # TODO(synk): get_action's softmax + multinomial sampling head could be
    # fused into the kernel tail (exp on the EUP slot, reductions on the XLU
    # slot) to eliminate the padded-logits writeback entirely; forward() must
    # return raw logits, so it is left to downstream JAX code here.
    print("KERNEL_OK")
</pallas_src>

<mosaic_0001>
module attributes {stable_mosaic.version = 11 : i64} {
  func.func @_mlp3_kernel(%arg0: i32, %arg1: memref<8x16xf32, #tpu.memory_space<vmem>>, %arg2: memref<16x128xbf16, #tpu.memory_space<vmem>>, %arg3: memref<1x128xf32, #tpu.memory_space<vmem>>, %arg4: memref<128x128xbf16, #tpu.memory_space<vmem>>, %arg5: memref<1x128xf32, #tpu.memory_space<vmem>>, %arg6: memref<128x128xbf16, #tpu.memory_space<vmem>>, %arg7: memref<1x128xf32, #tpu.memory_space<vmem>>, %arg8: memref<8x128xbf16, #tpu.memory_space<vmem>>) attributes {dimension_semantics = [#tpu.dimension_semantics<parallel>], iteration_bounds = array<i64: 1>, scalar_prefetch = 0 : i64, scratch_operands = 0 : i64, tpu.core_type = #tpu.core_type<tc>, window_params = [{transform_indices = @transform_0, window_bounds = array<i64: 8, 16>}, {pipeline_mode = #tpu.pipeline_mode<synchronous>, transform_indices = @transform_1, window_bounds = array<i64: 16, 128>}, {pipeline_mode = #tpu.pipeline_mode<synchronous>, transform_indices = @transform_2, window_bounds = array<i64: 1, 128>}, {pipeline_mode = #tpu.pipeline_mode<synchronous>, transform_indices = @transform_3, window_bounds = array<i64: 128, 128>}, {pipeline_mode = #tpu.pipeline_mode<synchronous>, transform_indices = @transform_4, window_bounds = array<i64: 1, 128>}, {pipeline_mode = #tpu.pipeline_mode<synchronous>, transform_indices = @transform_5, window_bounds = array<i64: 128, 128>}, {pipeline_mode = #tpu.pipeline_mode<synchronous>, transform_indices = @transform_6, window_bounds = array<i64: 1, 128>}, {transform_indices = @transform_7, window_bounds = array<i64: 8, 128>}]} {
    %c0 = arith.constant 0 : index
    %c0_0 = arith.constant 0 : index
    %0 = vector.load %arg1[%c0, %c0_0] : memref<8x16xf32, #tpu.memory_space<vmem>>, vector<8x16xf32>
    %1 = arith.truncf %0 : vector<8x16xf32> to vector<8x16xbf16>
    %c0_1 = arith.constant 0 : index
    %c0_2 = arith.constant 0 : index
    %2 = vector.load %arg2[%c0_1, %c0_2] : memref<16x128xbf16, #tpu.memory_space<vmem>>, vector<16x128xbf16>
    %cst = arith.constant dense<0.000000e+00> : vector<8x128xf32>
    %3 = tpu.matmul %1, %2, %cst {dimension_numbers = #tpu.dot_dimension_numbers<[1], [0], [0], [1], [0, 0, 1, 1], [], []>} : vector<8x16xbf16>, vector<16x128xbf16>, vector<8x128xf32> -> vector<8x128xf32>
    %c0_3 = arith.constant 0 : index
    %c0_4 = arith.constant 0 : index
    %4 = vector.load %arg3[%c0_3, %c0_4] : memref<1x128xf32, #tpu.memory_space<vmem>>, vector<1x128xf32>
    %5 = vector.broadcast %4 : vector<1x128xf32> to vector<8x128xf32>
    %6 = arith.addf %3, %5 : vector<8x128xf32>
    %cst_5 = arith.constant 0.000000e+00 : f32
    %7 = vector.broadcast %cst_5 : f32 to vector<8x128xf32>
    %8 = arith.maximumf %6, %7 : vector<8x128xf32>
    %9 = arith.truncf %8 : vector<8x128xf32> to vector<8x128xbf16>
    %c0_6 = arith.constant 0 : index
    %c0_7 = arith.constant 0 : index
    %10 = vector.load %arg4[%c0_6, %c0_7] : memref<128x128xbf16, #tpu.memory_space<vmem>>, vector<128x128xbf16>
    %cst_8 = arith.constant dense<0.000000e+00> : vector<8x128xf32>
    %11 = tpu.matmul %9, %10, %cst_8 {dimension_numbers = #tpu.dot_dimension_numbers<[1], [0], [0], [1], [0, 0, 1, 1], [], []>} : vector<8x128xbf16>, vector<128x128xbf16>, vector<8x128xf32> -> vector<8x128xf32>
    %c0_9 = arith.constant 0 : index
    %c0_10 = arith.constant 0 : index
    %12 = vector.load %arg5[%c0_9, %c0_10] : memref<1x128xf32, #tpu.memory_space<vmem>>, vector<1x128xf32>
    %13 = vector.broadcast %12 : vector<1x128xf32> to vector<8x128xf32>
    %14 = arith.addf %11, %13 : vector<8x128xf32>
    %cst_11 = arith.constant 0.000000e+00 : f32
    %15 = vector.broadcast %cst_11 : f32 to vector<8x128xf32>
    %16 = arith.maximumf %14, %15 : vector<8x128xf32>
    %17 = arith.truncf %16 : vector<8x128xf32> to vector<8x128xbf16>
    %c0_12 = arith.constant 0 : index
    %c0_13 = arith.constant 0 : index
    %18 = vector.load %arg6[%c0_12, %c0_13] : memref<128x128xbf16, #tpu.memory_space<vmem>>, vector<128x128xbf16>
    %cst_14 = arith.constant dense<0.000000e+00> : vector<8x128xf32>
    %19 = tpu.matmul %17, %18, %cst_14 {dimension_numbers = #tpu.dot_dimension_numbers<[1], [0], [0], [1], [0, 0, 1, 1], [], []>} : vector<8x128xbf16>, vector<128x128xbf16>, vector<8x128xf32> -> vector<8x128xf32>
    %c0_15 = arith.constant 0 : index
    %c0_16 = arith.constant 0 : index
    %20 = vector.load %arg7[%c0_15, %c0_16] : memref<1x128xf32, #tpu.memory_space<vmem>>, vector<1x128xf32>
    %21 = vector.broadcast %20 : vector<1x128xf32> to vector<8x128xf32>
    %22 = arith.addf %19, %21 : vector<8x128xf32>
    %23 = arith.truncf %22 : vector<8x128xf32> to vector<8x128xbf16>
    %c0_17 = arith.constant 0 : index
    %c0_18 = arith.constant 0 : index
    %24 = vector.load %arg8[%c0_17, %c0_18] : memref<8x128xbf16, #tpu.memory_space<vmem>>, vector<8x128xbf16>
    tpu.vector_store %arg8[%c0_17, %c0_18], %23 {strides = array<i32>} : memref<8x128xbf16, #tpu.memory_space<vmem>>, vector<8x128xbf16>,
    return
  }
  func.func @transform_0(%arg0: i32) -> (i32, i32) {
    %c0_i32 = arith.constant 0 : i32
    %c0_i32_0 = arith.constant 0 : i32
    return %arg0, %c0_i32 : i32, i32
  }
  func.func @transform_1(%arg0: i32) -> (i32, i32) {
    %c0_i32 = arith.constant 0 : i32
    %c0_i32_0 = arith.constant 0 : i32
    %c0_i32_1 = arith.constant 0 : i32
    return %c0_i32, %c0_i32_0 : i32, i32
  }
  func.func @transform_2(%arg0: i32) -> (i32, i32) {
    %c0_i32 = arith.constant 0 : i32
    %c0_i32_0 = arith.constant 0 : i32
    %c0_i32_1 = arith.constant 0 : i32
    return %c0_i32, %c0_i32_0 : i32, i32
  }
  func.func @transform_3(%arg0: i32) -> (i32, i32) {
    %c0_i32 = arith.constant 0 : i32
    %c0_i32_0 = arith.constant 0 : i32
    %c0_i32_1 = arith.constant 0 : i32
    return %c0_i32, %c0_i32_0 : i32, i32
  }
  func.func @transform_4(%arg0: i32) -> (i32, i32) {
    %c0_i32 = arith.constant 0 : i32
    %c0_i32_0 = arith.constant 0 : i32
    %c0_i32_1 = arith.constant 0 : i32
    return %c0_i32, %c0_i32_0 : i32, i32
  }
  func.func @transform_5(%arg0: i32) -> (i32, i32) {
    %c0_i32 = arith.constant 0 : i32
    %c0_i32_0 = arith.constant 0 : i32
    %c0_i32_1 = arith.constant 0 : i32
    return %c0_i32, %c0_i32_0 : i32, i32
  }
  func.func @transform_6(%arg0: i32) -> (i32, i32) {
    %c0_i32 = arith.constant 0 : i32
    %c0_i32_0 = arith.constant 0 : i32
    %c0_i32_1 = arith.constant 0 : i32
    return %c0_i32, %c0_i32_0 : i32, i32
  }
  func.func @transform_7(%arg0: i32) -> (i32, i32) {
    %c0_i32 = arith.constant 0 : i32
    %c0_i32_0 = arith.constant 0 : i32
    return %arg0, %c0_i32 : i32, i32
  }
}

</mosaic_0001>

<bundles_post_ra>
// kernel: actor_discrete_ppo_forward.1
= control target key start
LH: loop header
LB: loop body
LE: loop exit
PB: predicated region body
PF: predicated region fallthrough
CT: control target
= control target key end

     0   :  { %12 = vsyncpa [#allocation3], 0  ;;  %s616_s0 = inlined_call_operand.vmem [shape: f32[8,16], index: 0, kind: input, shape index: {}]   ;;  %s617_s1 = inlined_call_operand.vmem [shape: bf16[16,128], index: 1, kind: input, shape index: {}]   ;;  %s618_s2 = inlined_call_operand.vmem [shape: f32[1,128], index: 2, kind: input, shape index: {}]   ;;  %s619_s3 = inlined_call_operand.hbm [shape: bf16[128,128], index: 3, kind: input, shape index: {}]   ;;  %s620_s4 = inlined_call_operand.vmem [shape: f32[1,128], index: 4, kind: input, shape index: {}]   ;;  %s621_s5 = inlined_call_operand.hbm [shape: bf16[128,128], index: 5, kind: input, shape index: {}]   ;;  %s622_s6 = inlined_call_operand.vmem [shape: f32[1,128], index: 6, kind: input, shape index: {}]   ;;  %s623_s7 = inlined_call_operand.vmem [shape: bf16[8,128], index: 7, kind: output, shape index: {}]  }
   0x1   :  { %13 = vsyncpa [#allocation5], 0  ;;  %s508_s24 = smov [#allocation2]   ;;  %s460_s28 = scalar_lea.hbm %s619_s3, 1024 }
   0x2   :  { %s25_s25 = sshll.u32 %s508_s24, 4  ;;  %p461_p0 = scmp.ne.s32.totalorder %s619_s3, %s460_s28  ;;  %s26_s25 = int_to_ptr.vmem [resolvable:$true] %s25_s25 }
   0x3   :  { %p464_p1 = scmp.lt.u32.totalorder %s460_s28, %s619_s3 }
   0x5   :  { %p466_p2 = pnand %p464_p1, %p461_p0 }
   0x7   :  { %469 = shalt.err (!%p466_p2)
}
   0x8   :  { %s470_s10 = scalar_lea.vmem %s26_s25, 1024  ;;  %p475_p4 = scmp.lt.s32.totalorder %s26_s25, %s26_s25 }
   0x9   :  { %p471_p3 = scmp.ne.s32.totalorder %s26_s25, %s470_s10  ;;  %p476_p5 = scmp.lt.s32.totalorder %s470_s10, %s470_s10 }
   0xb   :  { %p477_p6 = por %p476_p5, %p475_p4 }
   0xd   :  { %p478_p7 = pnand %p477_p6, %p471_p3 }
   0xf   :  { %481 = shalt.err (!%p478_p7)
}
  0x10   :  { %s509_s11 = smov 64   ;;  %s510_s12 = smov 4  }
  0x11   :  { %31 = dma.hbm_to_vmem [thread:$0]  %s619_s3, 1024, %s26_s25, [#allocation3], %s509_s11, %s509_s11, %s510_s12  }
  0x12   :  { %s511_s15 = smov [#allocation4]   ;;  %s482_s19 = scalar_lea.hbm %s621_s5, 1024 }
  0x13   :  { %s39_s16 = sshll.u32 %s511_s15, 4  ;;  %p483_p8 = scmp.ne.s32.totalorder %s621_s5, %s482_s19  ;;  %s40_s16 = int_to_ptr.vmem [resolvable:$true] %s39_s16 }
  0x14   :  { %p486_p9 = scmp.lt.u32.totalorder %s482_s19, %s621_s5 }
  0x16   :  { %p488_p10 = pnand %p486_p9, %p483_p8 }
  0x18   :  { %491 = shalt.err (!%p488_p10)
}
  0x19   :  { %s492_s24 = scalar_lea.vmem %s40_s16, 1024  ;;  %p497_p12 = scmp.lt.s32.totalorder %s40_s16, %s40_s16 }
  0x1a   :  { %p493_p11 = scmp.ne.s32.totalorder %s40_s16, %s492_s24  ;;  %p498_p13 = scmp.lt.s32.totalorder %s492_s24, %s492_s24 }
  0x1c   :  { %p499_p0 = por %p498_p13, %p497_p12 }
  0x1e   :  { %p500_p1 = pnand %p499_p0, %p493_p11 }
  0x20   :  { %503 = shalt.err (!%p500_p1)
}
  0x21   :  { %45 = dma.hbm_to_vmem [thread:$0]  %s621_s5, 1024, %s40_s16, [#allocation5], %s509_s11, %s509_s11, %s510_s12  }
  0x22   :  { %504 = dma.done.wait [#allocation3], 1024  }
  0x23   :  { %505 = vsyncadd [#allocation3], 4294966272 }
  0x24   :  { %506 = dma.done.wait [#allocation5], 1024  }
  0x25   :  { %507 = vsyncadd [#allocation5], 4294966272  ;;  %v512_v0 = vmov 0.0   ;;  %vm513_vm0 = vmmov 0   ;;  %v443_v1 = vld [vmem:[%s617_s1] sm:$0xff]   ;;  %vm72_vm1 = vcmask 130048  }
  0x26   :  { %391 = vmatprep.subr.bf16.mxu0 %v512_v0  ;;  %393 = vmatprep.mubr.msk.bf16.mxu0 %vm513_vm0, %v512_v0  ;;  %v55_v2 = vld [vmem:[%s616_s0] sm:$0xff]  ;;  %v445_v5 = vld [vmem:[#allocation2 + $0x8] sm:$0xff]   ;;  %v446_v6 = vld [vmem:[#allocation2 + $0x10] sm:$0xff]  }
  0x27   :  { %397 = vmatprep.subr.bf16.mxu1 %v512_v0  ;;  %413 = vmatprep.mubr.msk.bf16.mxu1 %vm513_vm0, %v512_v0  ;;  %v56_v3 = vpack.c.bf16 %v55_v2, %v55_v2  ;;  %v444_v4 = vld [vmem:[#allocation2] sm:$0xff]   ;;  %v447_v7 = vld [vmem:[#allocation2 + $0x18] sm:$0xff]   ;;  %v449_v9 = vld [vmem:[#allocation2 + $0x28] sm:$0xff]  }
  0x28   :  { %392 = vmatpush3.bf16.msra.mxu0 %v443_v1  ;;  %398 = vmatpush3.bf16.msra.mxu1 %v444_v4  ;;  %v448_v8 = vld [vmem:[#allocation2 + $0x20] sm:$0xff]   ;;  %v450_v10 = vld [vmem:[#allocation2 + $0x30] sm:$0xff]   ;;  %v451_v11 = vld [vmem:[#allocation2 + $0x38] sm:$0xff]  }
  0x29   :  { %417 = vmatprep.subr.bf16.mxu0 %v512_v0  ;;  %399 = vmatprep.subr.bf16.mxu1 %v512_v0  ;;  %v452_v12 = vld [vmem:[#allocation4] sm:$0xff]   ;;  %v453_v13 = vld [vmem:[#allocation4 + $0x8] sm:$0xff]   ;;  %v454_v14 = vld [vmem:[#allocation4 + $0x10] sm:$0xff]  }
  0x2a   :  { %v455_v15 = vld [vmem:[#allocation4 + $0x18] sm:$0xff]   ;;  %v456_v16 = vld [vmem:[#allocation4 + $0x20] sm:$0xff]   ;;  %v457_v17 = vld [vmem:[#allocation4 + $0x28] sm:$0xff]  }
  0x2b   :  { %394 = vmatmul.mubr.msk.bf16.vlgmr.msra.gmra.mrb[0].mxu0 %vm72_vm1, %v56_v3  ;;  %v350_v18 = vld [vmem:[%s618_s2] ss:$0 sm:$0xff]  ;;  %v458_v26 = vld [vmem:[#allocation4 + $0x30] sm:$0xff]   ;;  %v459_v27 = vld [vmem:[#allocation4 + $0x38] sm:$0xff]  }
  0x2c   :  { %433 = vmatprep.mubr.msk.bf16.mxu0 %vm513_vm0, %v512_v0  ;;  %400 = vmatpush3.bf16.msra.mxu1 %v445_v5  ;;  %v353_v28 = vld [vmem:[%s620_s4] ss:$0 sm:$0xff] }
  0x2d   :  { %401 = vmatprep.subr.bf16.mxu1 %v512_v0  ;;  %418 = vmatpush3.bf16.msra.mxu0 %v452_v12  ;;  %v362_v36 = vld [vmem:[%s622_s6] ss:$0 sm:$0xff] }
  0x2e   :  { %419 = vmatprep.subr.bf16.mxu0 %v512_v0 }
  0x30   :  { %402 = vmatpush3.bf16.msra.mxu1 %v446_v6 }
  0x31   :  { %403 = vmatprep.subr.bf16.mxu1 %v512_v0  ;;  %420 = vmatpush3.bf16.msra.mxu0 %v453_v13 }
  0x32   :  { %421 = vmatprep.subr.bf16.mxu0 %v512_v0 }
  0x34   :  { %404 = vmatpush3.bf16.msra.mxu1 %v447_v7 }
  0x35   :  { %405 = vmatprep.subr.bf16.mxu1 %v512_v0  ;;  %422 = vmatpush3.bf16.msra.mxu0 %v454_v14 }
  0x36   :  { %423 = vmatprep.subr.bf16.mxu0 %v512_v0 }
  0x38   :  { %406 = vmatpush3.bf16.msra.mxu1 %v448_v8 }
  0x39   :  { %407 = vmatprep.subr.bf16.mxu1 %v512_v0  ;;  %424 = vmatpush3.bf16.msra.mxu0 %v455_v15 }
  0x3a   :  { %425 = vmatprep.subr.bf16.mxu0 %v512_v0 }
  0x3c   :  { %408 = vmatpush3.bf16.msra.mxu1 %v449_v9 }
  0x3d   :  { %409 = vmatprep.subr.bf16.mxu1 %v512_v0  ;;  %426 = vmatpush3.bf16.msra.mxu0 %v456_v16 }
  0x3e   :  { %427 = vmatprep.subr.bf16.mxu0 %v512_v0 }
  0x40   :  { %410 = vmatpush3.bf16.msra.mxu1 %v450_v10 }
  0x41   :  { %411 = vmatprep.subr.bf16.mxu1 %v512_v0  ;;  %428 = vmatpush3.bf16.msra.mxu0 %v457_v17 }
  0x42   :  { %429 = vmatprep.subr.bf16.mxu0 %v512_v0 }
  0x44   :  { %412 = vmatpush3.bf16.msra.mxu1 %v451_v11 }
  0x45   :  { %430 = vmatpush3.bf16.msra.mxu0 %v458_v26 }
  0x46   :  { %431 = vmatprep.subr.bf16.mxu0 %v512_v0 }
  0x49   :  { %432 = vmatpush3.bf16.msra.mxu0 %v459_v27 }
  0xfe   :  { %v110_v19 = vpop.f32.mrb[0].mxu0 }
  0xff   :  { %v111_v20 = vadd.f32 %v350_v18, %v110_v19  ;;  %v395_v21 = vpop.f32.mrb[1].mxu0 }
 0x100   :  { %v113_v22 = vpop.f32.mrb[2].mxu0 }
 0x101   :  { %v116_v23 = vmax.f32 %v111_v20, 0.0  ;;  %v396_v24 = vpop.f32.mrb[3].mxu0 }
 0x103   :  { %v117_v25 = vpack.c.bf16 %v116_v23, %v116_v23 }
 0x105   :  { %414 = vmatmul.mubr.bf16.vlgmr.msra.gmra.mrb[0].mxu1 %v117_v25 }
 0x1d8   :  { %v223_v29 = vpop.f32.mrb[0].mxu1 }
 0x1d9   :  { %v224_v30 = vadd.f32 %v353_v28, %v223_v29  ;;  %v415_v31 = vpop.f32.mrb[1].mxu1 }
 0x1da   :  { %v226_v32 = vpop.f32.mrb[2].mxu1 }
 0x1db   :  { %v229_v33 = vmax.f32 %v224_v30, 0.0  ;;  %v416_v34 = vpop.f32.mrb[3].mxu1 }
 0x1dd   :  { %v230_v35 = vpack.c.bf16 %v229_v33, %v229_v33 }
 0x1df   :  { %434 = vmatmul.mubr.bf16.vlgmr.msra.gmra.mrb[4].mxu0 %v230_v35 }
 0x2b2   :  { %v336_v37 = vpop.f32.mrb[4].mxu0 }
 0x2b3   :  { %v337_v38 = vadd.f32 %v362_v36, %v336_v37  ;;  %v435_v39 = vpop.f32.mrb[5].mxu0 }
 0x2b4   :  { %v339_v40 = vpop.f32.mrb[6].mxu0 }
 0x2b5   :  { %v342_v41 = vpack.c.bf16 %v337_v38, %v337_v38  ;;  %v436_v42 = vpop.f32.mrb[7].mxu0 }
 0x2b7   :  { %343 = vst [vmem:[%s623_s7] sm:$0xf] %v342_v41 }
 0x2b8   :  { %348 = vsyncpa [#allocation3], 1 }
 0x2b9   :  { %349 = vsyncpa [#allocation5], 1 }

</bundles_post_ra>
